<compile_context>
chip_gen: v5e
topology: v5e:2x2
jax: 0.10.0
libtpu: 0.0.40
codegen_flags: <defaults>
</compile_context>

<pallas_src>
from functools import partial

import jax
import jax.numpy as jnp
from jax.experimental import pallas as pl
from jax.experimental.pallas import tpu as pltpu

LANE = 128
SUBLANE_F32 = 8


def _round_up(n, m):
    return ((n + m - 1) // m) * m


# ----------------------------------------------------------------------------
# Fused Pallas kernel: all heads, both streams, two matmuls total.
# ----------------------------------------------------------------------------
def multihead_dueling_kernel(x_ref, w1_ref, b1_ref, w2_ref, b2_ref, out_ref):
    # Wide first layer: every head's advantage + value stream in one bf16 matmul.
    x = x_ref[...].astype(jnp.bfloat16)                                # (tb, H)
    h = jnp.dot(x, w1_ref[...], preferred_element_type=jnp.float32)    # (tb, K1) f32 acc
    h = jnp.maximum(h + b1_ref[...], 0.0)                              # bias + ReLU, f32 VPU

    # Block-diagonal second layer with the dueling combine pre-folded into
    # w2/b2; the logits land directly in the lane-dense advantage columns.
    y = jnp.dot(h.astype(jnp.bfloat16), w2_ref[...],
                preferred_element_type=jnp.float32) + b2_ref[...]      # (tb, out_w)
    out_ref[...] = y


# ----------------------------------------------------------------------------
# Parameter construction (per-head, PyTorch-equivalent layout) and packing
# into the fused weights consumed by the kernel.
# ----------------------------------------------------------------------------
def init_head_params(key, hidden_size, output_size):
    ks = jax.random.split(key, 8)
    scale = 1.0 / jnp.sqrt(hidden_size)

    def lin(kw, kb, fan_in, fan_out):
        w = jax.random.uniform(kw, (fan_in, fan_out), jnp.float32, -scale, scale)
        b = jax.random.uniform(kb, (1, fan_out), jnp.float32, -scale, scale)
        return w, b

    wa1, ba1 = lin(ks[0], ks[1], hidden_size, hidden_size)
    wa2, ba2 = lin(ks[2], ks[3], hidden_size, output_size)
    wv1, bv1 = lin(ks[4], ks[5], hidden_size, hidden_size)
    wv2, bv2 = lin(ks[6], ks[7], hidden_size, 1)
    return dict(wa1=wa1, ba1=ba1, wa2=wa2, ba2=ba2,
                wv1=wv1, bv1=bv1, wv2=wv2, bv2=bv2)


def init_multihead_params(key, hidden_size, output_size_list):
    keys = jax.random.split(key, len(output_size_list))
    return [init_head_params(k, hidden_size, o)
            for k, o in zip(keys, output_size_list)]


def pack_multihead_params(head_params, hidden_size, output_size_list):
    """Fuse per-head weights into the merged layout used by the kernel.

    Column layout of y (before folding): [adv_0 | adv_1 | ... | v_0 v_1 ... | pad].
    The dueling combine is folded here so the kernel is just two matmuls.
    """
    n = len(head_params)
    H = hidden_size
    K1 = 2 * H * n
    total_adv = sum(output_size_list)
    out_w = _round_up(total_adv + n, LANE)   # lane-dense output slab width

    # Layer 1: [wa1_0 | wv1_0 | wa1_1 | wv1_1 | ...]  -> (H, 2*H*n)
    w1 = jnp.concatenate(
        [jnp.concatenate([p["wa1"], p["wv1"]], axis=1) for p in head_params], axis=1)
    b1 = jnp.concatenate(
        [jnp.concatenate([p["ba1"], p["bv1"]], axis=1) for p in head_params], axis=1)

    # Layer 2: block-diagonal, zero-padded to out_w output columns.
    w2 = jnp.zeros((K1, out_w), jnp.float32)
    b2 = jnp.zeros((1, out_w), jnp.float32)
    adv_sel = jnp.zeros((out_w, n), jnp.float32)   # one-hot: adv column -> head
    val_sel = jnp.zeros((out_w, n), jnp.float32)   # one-hot: value column -> head

    off = 0
    for i, (p, o) in enumerate(zip(head_params, output_size_list)):
        ra = 2 * H * i          # rows of head i's advantage hidden in h
        rv = ra + H             # rows of head i's value hidden in h
        w2 = w2.at[ra:ra + H, off:off + o].set(p["wa2"])
        w2 = w2.at[rv:rv + H, total_adv + i:total_adv + i + 1].set(p["wv2"])
        b2 = b2.at[0, off:off + o].set(p["ba2"][0])
        b2 = b2.at[0, total_adv + i].set(p["bv2"][0, 0])
        adv_sel = adv_sel.at[off:off + o, i].set(1.0)
        val_sel = val_sel.at[total_adv + i, i].set(1.0)
        off += o

    # Fold the dueling combine (a - mean(a) + v) into w2/b2:
    #   out = y @ (I + M),  M = (val_sel - adv_sel @ diag(1/O_i)) @ adv_sel^T
    inv_o = 1.0 / jnp.asarray(list(output_size_list), jnp.float32)
    M = (val_sel - adv_sel * inv_o[None, :]) @ adv_sel.T
    fold = jnp.eye(out_w, dtype=jnp.float32) + M
    w2f = w2 @ fold
    b2f = b2 @ fold

    # bf16 weights for the MXU; biases stay f32 for the VPU-side adds.
    return dict(w1=w1.astype(jnp.bfloat16), b1=b1,
                w2=w2f.astype(jnp.bfloat16), b2=b2f)


# ----------------------------------------------------------------------------
# MultiHead forward: one fused pallas_call with a batch grid, then slice
# per-head logits (lane-dense slab stays untouched in-kernel).
# ----------------------------------------------------------------------------
@partial(jax.jit, static_argnames=("output_size_list", "tile_b"))
def multihead_forward(x, packed, output_size_list, tile_b=256):
    B, H = x.shape
    K1 = packed["w1"].shape[1]
    out_w = packed["w2"].shape[1]

    # Batch tile: multiple of 8 rows (f32 sublane tile); pad B so the grid
    # divides evenly.  Weights are pinned at block (0,0) and stay resident.
    tb = max(SUBLANE_F32, min(tile_b, _round_up(B, SUBLANE_F32)))
    tb = _round_up(tb, SUBLANE_F32)
    B_pad = _round_up(B, tb)
    if B_pad != B:
        x = jnp.pad(x, ((0, B_pad - B), (0, 0)))
    grid = (B_pad // tb,)

    # Scheduling hint (two matmuls, bf16 weight bytes).
    flops = 2 * B_pad * (H * K1 + K1 * out_w)
    bytes_accessed = (4 * int(x.size)
                      + 2 * (int(packed["w1"].size) + int(packed["w2"].size))
                      + 4 * (int(packed["b1"].size) + int(packed["b2"].size))
                      + 4 * B_pad * out_w)

    # VMEM budget: resident weights + double-buffered x/out tiles, with
    # headroom; clamp to v7x's 64 MiB physical VMEM per TC.
    weight_bytes = (2 * (int(packed["w1"].size) + int(packed["w2"].size))
                    + 4 * (int(packed["b1"].size) + int(packed["b2"].size)))
    tile_bytes = 2 * 4 * tb * (H + out_w)
    vmem_limit = int(min(64 * 1024 * 1024,
                         max(4 * 1024 * 1024, 2 * (weight_bytes + tile_bytes))))

    out_slab = pl.pallas_call(
        multihead_dueling_kernel,
        out_shape=jax.ShapeDtypeStruct((B_pad, out_w), jnp.float32),
        grid=grid,
        in_specs=[
            pl.BlockSpec((tb, H), lambda i: (i, 0)),        # x: streams over batch
            pl.BlockSpec((H, K1), lambda i: (0, 0)),        # w1 (bf16): resident
            pl.BlockSpec((1, K1), lambda i: (0, 0)),        # b1 (f32): resident
            pl.BlockSpec((K1, out_w), lambda i: (0, 0)),    # w2' (bf16): resident
            pl.BlockSpec((1, out_w), lambda i: (0, 0)),     # b2' (f32): resident
        ],
        out_specs=pl.BlockSpec((tb, out_w), lambda i: (i, 0)),
        compiler_params=pltpu.CompilerParams(
            dimension_semantics=("parallel",),               # shard over v7x's 2 TCs
            vmem_limit_bytes=vmem_limit),
        cost_estimate=pl.CostEstimate(
            flops=flops, transcendentals=0, bytes_accessed=bytes_accessed),
    )(x, packed["w1"], packed["b1"], packed["w2"], packed["b2"])

    # Per-head logits live in the leading (lane-dense) advantage columns.
    logits = []
    off = 0
    for o in output_size_list:
        logits.append(out_slab[:B, off:off + o])
        off += o
    return {"logit": logits}


# Pure-JAX f32 reference (per-head, mirrors the PyTorch module) for validation.
def multihead_reference(x, head_params):
    logits = []
    for p in head_params:
        ha = jnp.maximum(x @ p["wa1"] + p["ba1"], 0.0)
        a = ha @ p["wa2"] + p["ba2"]
        hv = jnp.maximum(x @ p["wv1"] + p["bv1"], 0.0)
        v = hv @ p["wv2"] + p["bv2"]
        logits.append(a - jnp.mean(a, axis=-1, keepdims=True) + v)
    return {"logit": logits}


if __name__ == "__main__":
    B = 4
    HIDDEN = 32
    OUTPUT_SIZE_LIST = (2, 3, 5)

    key = jax.random.PRNGKey(0)
    k_x, k_p = jax.random.split(key)
    x = jax.random.normal(k_x, (B, HIDDEN), jnp.float32)
    head_params = init_multihead_params(k_p, HIDDEN, list(OUTPUT_SIZE_LIST))
    packed = pack_multihead_params(head_params, HIDDEN, list(OUTPUT_SIZE_LIST))

    out = multihead_forward(x, packed, OUTPUT_SIZE_LIST)
    jax.block_until_ready(out)

    ref = multihead_reference(x, head_params)
    for i, o_size in enumerate(OUTPUT_SIZE_LIST):
        assert out["logit"][i].shape == (B, o_size), out["logit"][i].shape
        err = jnp.max(jnp.abs(out["logit"][i] - ref["logit"][i]))
        # bf16 weights vs. f32 reference -> loosened tolerance.
        assert jnp.allclose(out["logit"][i], ref["logit"][i],
                            atol=2e-2, rtol=2e-2), (i, err)

    print("KERNEL_OK")
</pallas_src>

<mosaic_0001>
module attributes {stable_mosaic.version = 11 : i64} {
  func.func @multihead_dueling_kernel(%arg0: i32, %arg1: memref<8x32xf32, #tpu.memory_space<vmem>>, %arg2: memref<32x192xbf16, #tpu.memory_space<vmem>>, %arg3: memref<1x192xf32, #tpu.memory_space<vmem>>, %arg4: memref<192x128xbf16, #tpu.memory_space<vmem>>, %arg5: memref<1x128xf32, #tpu.memory_space<vmem>>, %arg6: memref<8x128xf32, #tpu.memory_space<vmem>>) attributes {dimension_semantics = [#tpu.dimension_semantics<parallel>], iteration_bounds = array<i64: 1>, scalar_prefetch = 0 : i64, scratch_operands = 0 : i64, tpu.core_type = #tpu.core_type<tc>, window_params = [{transform_indices = @transform_0, window_bounds = array<i64: 8, 32>}, {pipeline_mode = #tpu.pipeline_mode<synchronous>, transform_indices = @transform_1, window_bounds = array<i64: 32, 192>}, {pipeline_mode = #tpu.pipeline_mode<synchronous>, transform_indices = @transform_2, window_bounds = array<i64: 1, 192>}, {pipeline_mode = #tpu.pipeline_mode<synchronous>, transform_indices = @transform_3, window_bounds = array<i64: 192, 128>}, {pipeline_mode = #tpu.pipeline_mode<synchronous>, transform_indices = @transform_4, window_bounds = array<i64: 1, 128>}, {transform_indices = @transform_5, window_bounds = array<i64: 8, 128>}]} {
    %c0 = arith.constant 0 : index
    %c0_0 = arith.constant 0 : index
    %0 = vector.load %arg1[%c0, %c0_0] : memref<8x32xf32, #tpu.memory_space<vmem>>, vector<8x32xf32>
    %1 = arith.truncf %0 : vector<8x32xf32> to vector<8x32xbf16>
    %c0_1 = arith.constant 0 : index
    %c0_2 = arith.constant 0 : index
    %2 = vector.load %arg2[%c0_1, %c0_2] : memref<32x192xbf16, #tpu.memory_space<vmem>>, vector<32x192xbf16>
    %cst = arith.constant dense<0.000000e+00> : vector<8x192xf32>
    %3 = tpu.matmul %1, %2, %cst {dimension_numbers = #tpu.dot_dimension_numbers<[1], [0], [0], [1], [0, 0, 1, 1], [], []>} : vector<8x32xbf16>, vector<32x192xbf16>, vector<8x192xf32> -> vector<8x192xf32>
    %c0_3 = arith.constant 0 : index
    %c0_4 = arith.constant 0 : index
    %4 = vector.load %arg3[%c0_3, %c0_4] : memref<1x192xf32, #tpu.memory_space<vmem>>, vector<1x192xf32>
    %5 = vector.broadcast %4 : vector<1x192xf32> to vector<8x192xf32>
    %6 = arith.addf %3, %5 : vector<8x192xf32>
    %cst_5 = arith.constant 0.000000e+00 : f32
    %7 = vector.broadcast %cst_5 : f32 to vector<8x192xf32>
    %8 = arith.maximumf %6, %7 : vector<8x192xf32>
    %9 = arith.truncf %8 : vector<8x192xf32> to vector<8x192xbf16>
    %c0_6 = arith.constant 0 : index
    %c0_7 = arith.constant 0 : index
    %10 = vector.load %arg4[%c0_6, %c0_7] : memref<192x128xbf16, #tpu.memory_space<vmem>>, vector<192x128xbf16>
    %cst_8 = arith.constant dense<0.000000e+00> : vector<8x128xf32>
    %11 = tpu.matmul %9, %10, %cst_8 {dimension_numbers = #tpu.dot_dimension_numbers<[1], [0], [0], [1], [0, 0, 1, 1], [], []>} : vector<8x192xbf16>, vector<192x128xbf16>, vector<8x128xf32> -> vector<8x128xf32>
    %c0_9 = arith.constant 0 : index
    %c0_10 = arith.constant 0 : index
    %12 = vector.load %arg5[%c0_9, %c0_10] : memref<1x128xf32, #tpu.memory_space<vmem>>, vector<1x128xf32>
    %13 = vector.broadcast %12 : vector<1x128xf32> to vector<8x128xf32>
    %14 = arith.addf %11, %13 : vector<8x128xf32>
    %c0_11 = arith.constant 0 : index
    %c0_12 = arith.constant 0 : index
    %15 = vector.load %arg6[%c0_11, %c0_12] : memref<8x128xf32, #tpu.memory_space<vmem>>, vector<8x128xf32>
    tpu.vector_store %arg6[%c0_11, %c0_12], %14 {strides = array<i32>} : memref<8x128xf32, #tpu.memory_space<vmem>>, vector<8x128xf32>,
    return
  }
  func.func @transform_0(%arg0: i32) -> (i32, i32) {
    %c0_i32 = arith.constant 0 : i32
    %c0_i32_0 = arith.constant 0 : i32
    return %arg0, %c0_i32 : i32, i32
  }
  func.func @transform_1(%arg0: i32) -> (i32, i32) {
    %c0_i32 = arith.constant 0 : i32
    %c0_i32_0 = arith.constant 0 : i32
    %c0_i32_1 = arith.constant 0 : i32
    return %c0_i32, %c0_i32_0 : i32, i32
  }
  func.func @transform_2(%arg0: i32) -> (i32, i32) {
    %c0_i32 = arith.constant 0 : i32
    %c0_i32_0 = arith.constant 0 : i32
    %c0_i32_1 = arith.constant 0 : i32
    return %c0_i32, %c0_i32_0 : i32, i32
  }
  func.func @transform_3(%arg0: i32) -> (i32, i32) {
    %c0_i32 = arith.constant 0 : i32
    %c0_i32_0 = arith.constant 0 : i32
    %c0_i32_1 = arith.constant 0 : i32
    return %c0_i32, %c0_i32_0 : i32, i32
  }
  func.func @transform_4(%arg0: i32) -> (i32, i32) {
    %c0_i32 = arith.constant 0 : i32
    %c0_i32_0 = arith.constant 0 : i32
    %c0_i32_1 = arith.constant 0 : i32
    return %c0_i32, %c0_i32_0 : i32, i32
  }
  func.func @transform_5(%arg0: i32) -> (i32, i32) {
    %c0_i32 = arith.constant 0 : i32
    %c0_i32_0 = arith.constant 0 : i32
    return %arg0, %c0_i32 : i32, i32
  }
}

</mosaic_0001>

<bundles_post_ra>
// kernel: multihead_forward.1
= control target key start
LH: loop header
LB: loop body
LE: loop exit
PB: predicated region body
PF: predicated region fallthrough
CT: control target
= control target key end

     0   :  { %10 = vsyncpa [#allocation3], 0  ;;  %s452_s0 = inlined_call_operand.vmem [shape: f32[8,32], index: 0, kind: input, shape index: {}]   ;;  %s453_s1 = inlined_call_operand.hbm [shape: bf16[32,192], index: 1, kind: input, shape index: {}]   ;;  %s454_s2 = inlined_call_operand.vmem [shape: f32[1,192], index: 2, kind: input, shape index: {}]   ;;  %s455_s3 = inlined_call_operand.hbm [shape: bf16[192,128], index: 3, kind: input, shape index: {}]   ;;  %s456_s4 = inlined_call_operand.vmem [shape: f32[1,128], index: 4, kind: input, shape index: {}]   ;;  %s457_s5 = inlined_call_operand.vmem [shape: f32[8,128], index: 5, kind: output, shape index: {}]  }
   0x1   :  { %s18_s20 = sshll.u32 %s453_s1, 4  ;;  %s19_s20 = int_to_ptr.hbm [resolvable:$true] %s18_s20 }
   0x2   :  { %11 = vsyncpa [#allocation5], 0  ;;  %s398_s21 = smov [#allocation2]   ;;  %s33_s25 = sshll.u32 %s455_s3, 4  ;;  %s34_s25 = int_to_ptr.hbm [resolvable:$true] %s33_s25 }
   0x3   :  { %s20_s22 = sshll.u32 %s398_s21, 4  ;;  %s399_s26 = smov 128   ;;  %s21_s22 = int_to_ptr.vmem [resolvable:$true] %s20_s22 }
   0x4   :  { %s400_s27 = smov 8   ;;  %s401_s28 = smov [#allocation4]  }
   0x5   :  { %26 = dma.hbm_to_vmem [thread:$0]  %s19_s20, 512, %s21_s22, [#allocation3], %s399_s26, %s399_s26, %s400_s27  }
   0x6   :  { %s35_s29 = sshll.u32 %s401_s28, 4  ;;  %s402_s30 = smov 64   ;;  %s36_s29 = int_to_ptr.vmem [resolvable:$true] %s35_s29 }
   0x7   :  { %s403_s6 = smov 4  }
   0x8   :  { %41 = dma.hbm_to_vmem [thread:$0]  %s34_s25, 1536, %s36_s29, [#allocation5], %s402_s30, %s402_s30, %s403_s6  }
   0x9   :  { %394 = dma.done.wait [#allocation3], 512  }
   0xa   :  { %395 = vsyncadd [#allocation3], 4294966784 }
   0xb   :  { %396 = dma.done.wait [#allocation5], 1536  }
   0xc   :  { %397 = vsyncadd [#allocation5], 4294965760  ;;  %v266_v0 = vld [vmem:[#allocation2 + $0x10] sm:$0xf]  ;;  %v326_v1 = vld [vmem:[#allocation2 + $0x14] sm:$0xf0] }
   0xd   :  { %v325_v2 = vld [vmem:[#allocation2 + $0x14] sm:$0xf]  ;;  %v267_v3 = vor.u32 %v326_v1, %v266_v0  ;;  %v268_v4 = vld [vmem:[#allocation2 + $0x18] sm:$0xf0]  ;;  %v258_v5 = vld [vmem:[#allocation2] sm:$0xf] }
   0xe   :  { %v324_v6 = vld [vmem:[#allocation2 + $0x4] sm:$0xf0]  ;;  %v271_v7 = vor.u32 %v325_v2, %v268_v4  ;;  %v323_v8 = vld [vmem:[#allocation2 + $0x4] sm:$0xf]  ;;  %v260_v9 = vld [vmem:[#allocation2 + $0x8] sm:$0xf0] }
   0xf   :  { %95 = vmatpush.bf16.msra.mxu0 %v267_v3  ;;  %v259_v10 = vor.u32 %v324_v6, %v258_v5  ;;  %v53_v11 = vld [vmem:[%s452_s0] sm:$0xff]  ;;  %v334_v12 = vld [vmem:[#allocation4 + $0x38] sm:$0xff]  ;;  %v263_v13 = vor.u32 %v323_v8, %v260_v9  ;;  %v333_v15 = vld [vmem:[#allocation4 + $0x30] sm:$0xff]  ;;  %vm85_vm0 = vcmask 261120   ;;  %vm219_vm1 = vcmask 523264  }
  0x10   :  { %108 = vmatpush.bf16.msra.mxu1 %v271_v7  ;;  %v338_v14 = vld [vmem:[#allocation4 + $0x58] sm:$0xff]  ;;  %223 = vmatpush.bf16.msra.mxu2 %v334_v12  ;;  %v54_v16 = vpack.c.bf16 %v53_v11, %v53_v11  ;;  %v337_v17 = vld [vmem:[#allocation4 + $0x50] sm:$0xff]  ;;  %v332_v18 = vld [vmem:[#allocation4 + $0x28] sm:$0xff] }
  0x11   :  { %240 = vmatpush.bf16.msra.mxu3 %v338_v14  ;;  %v331_v19 = vld [vmem:[#allocation4 + $0x20] sm:$0xff]  ;;  %v330_v20 = vld [vmem:[#allocation4 + $0x18] sm:$0xff]  ;;  %v329_v21 = vld [vmem:[#allocation4 + $0x10] sm:$0xff] }
  0x12   :  { %v328_v22 = vld [vmem:[#allocation4 + $0x8] sm:$0xff]  ;;  %v327_v24 = vld [vmem:[#allocation4] sm:$0xff] }
  0x13   :  { %96 = vmatpush.bf16.msra.mxu0 %v259_v10  ;;  %v336_v23 = vld [vmem:[#allocation4 + $0x48] sm:$0xff]  ;;  %v335_v25 = vld [vmem:[#allocation4 + $0x40] sm:$0xff] }
  0x14   :  { %109 = vmatpush.bf16.msra.mxu1 %v263_v13  ;;  %224 = vmatpush.bf16.msra.mxu2 %v333_v15  ;;  %v59_v26 = vld [vmem:[%s454_s2] sm:$0x3] }
  0x15   :  { %241 = vmatpush.bf16.msra.mxu3 %v337_v17  ;;  %v61_v27 = vperm.slane %v59_v26, 0  ;;  %v62_v28 = vperm.slane %v59_v26, 1  ;;  %v345_v39 = vld [vmem:[%s456_s4] ss:$0 sm:$0xff] }
  0x16   :  { %272 = vmatmul.msk.bf16.vlgmr.msra.gmra.mxu0 %vm85_vm0, %v54_v16 }
  0x17   :  { %273 = vmatmul.msk.bf16.vlgmr.msra.gmra.mxu1 %vm85_vm0, %v54_v16 }
  0x18   :  { %225 = vmatpush.bf16.msra.mxu2 %v332_v18 }
  0x19   :  { %242 = vmatpush.bf16.msra.mxu3 %v336_v23 }
  0x1c   :  { %226 = vmatpush.bf16.msra.mxu2 %v331_v19 }
  0x1d   :  { %243 = vmatpush.bf16.msra.mxu3 %v335_v25 }
  0x20   :  { %227 = vmatpush.bf16.msra.mxu2 %v330_v20 }
  0x24   :  { %228 = vmatpush.bf16.msra.mxu2 %v329_v21 }
  0x28   :  { %229 = vmatpush.bf16.msra.mxu2 %v328_v22 }
  0x2c   :  { %230 = vmatpush.bf16.msra.mxu2 %v327_v24 }
  0x93   :  { %v98_v29 = vpop.f32.mrf.mxu0 }
  0x94   :  { %v99_v30 = vadd.f32 %v98_v29, %v61_v27  ;;  %v111_v31 = vpop.f32.mrf.mxu1 }
  0x95   :  { %v112_v32 = vadd.f32 %v111_v31, %v62_v28 }
  0x96   :  { %v115_v33 = vmax.f32 %v99_v30, 0.0 }
  0x97   :  { %v116_v34 = vmax.f32 %v112_v32, 0.0 }
  0x98   :  { %v117_v35 = vpack.c.bf16 %v115_v33, %v115_v33 }
  0x99   :  { %v118_v36 = vpack.c.bf16 %v116_v34, %v116_v34 }
  0x9a   :  { %231 = vmatmul.bf16.vlgmr.msra.gmra.mxu2 %v117_v35 }
  0x9b   :  { %322 = vmatmul.msk.bf16.vlgmr.msra.gmra.mxu3 %vm219_vm1, %v118_v36  ;;  %v100_v37 = vpop.f32.mrf.mxu0 }
  0x9c   :  { %v113_v38 = vpop.f32.mrf.mxu1 }
 0x11d   :  { %v232_v40 = vpop.f32.mrf.mxu2 }
 0x11e   :  { %v233_v41 = vadd.f32 %v345_v39, %v232_v40  ;;  %v245_v42 = vpop.f32.mrf.mxu3 }
 0x120   :  { %v246_v43 = vadd.f32 %v245_v42, %v233_v41 }
 0x122   :  { %249 = vst [vmem:[%s457_s5] sm:$0xff] %v246_v43 }
 0x125   :  { %v234_v44 = vpop.f32.mrf.mxu2 }
 0x126   :  { %v247_v45 = vpop.f32.mrf.mxu3 }
 0x127   :  { %254 = vsyncpa [#allocation3], 1 }
 0x128   :  { %255 = vsyncpa [#allocation5], 1 }

</bundles_post_ra>
